<compile_context>
chip_gen: v7x
topology: tpu7x:2x2x1
jax: 0.10.0
libtpu: 0.0.40
codegen_flags: <defaults>
</compile_context>

<pallas_src>
import jax
import jax.numpy as jnp
import numpy as np
from jax.experimental import pallas as pl
from jax.experimental.pallas import tpu as pltpu

# ---------------- configuration (small synthetic model) ----------------
NUM_TASKS = 3                       # len(paramslist) - 1
NUM_MODELS = NUM_TASKS + 1          # pretrained + task-finetuned models
VOCAB = 128
HIDDEN = 32
BATCH = 2
SEQ = 8
T = BATCH * SEQ                     # flattened tokens per step


# ---------------- fused Pallas kernel: merge + forward + loss ----------------
def adamerge_forward_kernel(lam_ref, ids_ref, labels_ref,
                            emb_bank_ref, head_bank_ref,
                            logits_ref, loss_ref):
    # lam_ref:       SMEM (M,)           f32   -- [1, clamp(lambda_1..M-1)]
    # ids_ref:       VMEM (T, 1)         int32
    # labels_ref:    VMEM (T, 1)         int32
    # emb_bank_ref:  VMEM (M, D, V)      f32   -- stacked per-model embedding weights (lane-dense)
    # head_bank_ref: VMEM (M, D, V)      f32   -- stacked per-model lm_head weights
    # logits_ref:    VMEM (T, V)         f32
    # loss_ref:      SMEM (1, 1)         f32

    # --- AdaMerging weighted parameter merge (VPU weighted sum, no HBM writeback) ---
    emb = lam_ref[0] * emb_bank_ref[0]           # (D, V), lane-dense
    head = lam_ref[0] * head_bank_ref[0]         # (D, V)
    for m in range(1, NUM_MODELS):               # unrolled, M = 4
        emb = emb + lam_ref[m] * emb_bank_ref[m]
        head = head + lam_ref[m] * head_bank_ref[m]

    # --- vectorized one-hot token selector (single compare, no unrolled chain) ---
    col = jax.lax.broadcasted_iota(jnp.int32, (T, VOCAB), 1)     # (T, V) lane index
    ids_col = ids_ref[...]                                       # (T, 1) int32
    labels_col = labels_ref[...]                                 # (T, 1) int32
    onehot = (col == ids_col).astype(jnp.float32)                # (T, V)

    # --- proxy-model forward: embedding lookup + LM head (MXU) ---
    # x[t, d] = sum_v onehot[t, v] * emb[d, v]  (contract V on both; emb stays lane-dense)
    x = jax.lax.dot_general(onehot, emb, (((1,), (1,)), ((), ())),
                            preferred_element_type=jnp.float32)  # (T, D)
    logits = jnp.dot(x, head, preferred_element_type=jnp.float32)  # (T, V)
    logits_ref[...] = logits

    # --- fused token cross-entropy (log-softmax + masked label gather + mean) ---
    mx = jnp.max(logits, axis=-1, keepdims=True)                   # (T, 1)
    ex = jnp.exp(logits - mx)                                      # EUP
    lse = mx + jnp.log(jnp.sum(ex, axis=-1, keepdims=True))        # (T, 1)
    tgt = jnp.sum(jnp.where(col == labels_col, logits, 0.0),
                  axis=-1, keepdims=True)                          # (T, 1), no lab_onehot
    nll = lse - tgt                                                # (T, 1)
    loss_ref[0, 0] = jnp.sum(nll) * (1.0 / T)


def adamerging_forward(lambdas_flat, ids_col, labels_col, emb_bank, head_bank):
    """lambdas (M,) f32, ids/labels (T,1) int32, banks (M,D,V) f32 ->
       (logits (T,V) f32, loss (1,1) f32)."""
    smem = pltpu.MemorySpace.SMEM
    vmem = pltpu.MemorySpace.VMEM
    return pl.pallas_call(
        adamerge_forward_kernel,
        out_shape=(jax.ShapeDtypeStruct((T, VOCAB), jnp.float32),
                   jax.ShapeDtypeStruct((1, 1), jnp.float32)),
        # No grid: single invocation on full arrays (avoids per-step pipeline overhead).
        in_specs=[
            pl.BlockSpec(memory_space=smem),   # lambdas
            pl.BlockSpec(memory_space=vmem),   # input_ids (T,1)
            pl.BlockSpec(memory_space=vmem),   # labels (T,1)
            pl.BlockSpec(memory_space=vmem),   # embedding bank (M,D,V)
            pl.BlockSpec(memory_space=vmem),   # lm_head bank (M,D,V)
        ],
        out_specs=(
            pl.BlockSpec(memory_space=vmem),   # logits (T,V)
            pl.BlockSpec(memory_space=smem),   # loss (1,1) scalar
        ),
    )(lambdas_flat, ids_col, labels_col, emb_bank, head_bank)


# ---------------- AdaMerging wrapper (glue in plain JAX) ----------------
class AdaMergingJAX:
    def __init__(self, emb_bank, head_bank):
        # Per-parameter stacked banks (row 0 = pretrained, rows 1.. = task-finetuned),
        # i.e. the zip(*paramslist) of the original, stacked along a model axis.
        # emb_bank is stored lane-dense as (M, HIDDEN, VOCAB): emb_bank[m].T is the
        # (VOCAB, HIDDEN) embedding table of model m.
        self.emb_bank = emb_bank          # (M, HIDDEN, VOCAB)
        self.head_bank = head_bank        # (M, HIDDEN, VOCAB)
        self.pretrain_lambdas = jnp.ones((1, 1), jnp.float32)
        self.lambdas_raw = jnp.ones((1, NUM_TASKS), jnp.float32) * 0.3   # trainable

    def lambdas(self):
        task_lambdas = jnp.clip(self.lambdas_raw, 0.0, 1.0)
        return jnp.concatenate((self.pretrain_lambdas, task_lambdas), axis=1)  # (1, M)

    def forward(self, input_ids, attention_mask, labels):
        del attention_mask  # TODO(synk): unused by the linear proxy (no padding mask)
        lam = self.lambdas().reshape(-1)                                  # (M,)
        logits_flat, loss = adamerging_forward(
            lam,
            input_ids.reshape(-1, 1).astype(jnp.int32),
            labels.reshape(-1, 1).astype(jnp.int32),
            self.emb_bank, self.head_bank)
        logits = logits_flat.reshape(BATCH, SEQ, VOCAB)
        return loss[0, 0], logits


# ---------------- main ----------------
if __name__ == "__main__":
    key = jax.random.PRNGKey(0)
    k_e, k_h, k_ids, k_lab = jax.random.split(key, 4)

    # deterministic synthetic parameter bank: pretrained + NUM_TASKS finetuned models
    emb_bank = jax.random.normal(k_e, (NUM_MODELS, HIDDEN, VOCAB), jnp.float32) * 0.02
    head_bank = jax.random.normal(k_h, (NUM_MODELS, HIDDEN, VOCAB), jnp.float32) * 0.02

    input_ids = jax.random.randint(k_ids, (BATCH, SEQ), 0, VOCAB, dtype=jnp.int32)
    attention_mask = jnp.ones((BATCH, SEQ), jnp.int32)
    labels = jax.random.randint(k_lab, (BATCH, SEQ), 0, VOCAB, dtype=jnp.int32)

    model = AdaMergingJAX(emb_bank, head_bank)
    loss, logits = model.forward(input_ids, attention_mask, labels)
    jax.block_until_ready((loss, logits))

    # cross-check the fused Pallas kernel against a plain-JAX reference
    lam = model.lambdas()[0]                                              # (M,)
    emb_dv = jnp.einsum('m,mdv->dv', lam, emb_bank)                       # (D, V) lane-dense merge
    head_ref = jnp.einsum('m,mdv->dv', lam, head_bank)                    # (D, V)
    emb_table_ref = emb_dv.T                                              # (V, D) embedding table
    logits_ref = (jax.nn.one_hot(input_ids.reshape(-1), VOCAB, dtype=jnp.float32)
                  @ emb_table_ref @ head_ref).reshape(BATCH, SEQ, VOCAB)
    logz_ref = jax.nn.log_softmax(logits_ref, axis=-1)
    nll_ref = -jnp.take_along_axis(logz_ref, labels[..., None], axis=-1)[..., 0]
    loss_ref = jnp.mean(nll_ref)

    np.testing.assert_allclose(np.asarray(logits), np.asarray(logits_ref),
                               rtol=1e-4, atol=1e-4)
    np.testing.assert_allclose(np.asarray(loss), np.asarray(loss_ref),
                               rtol=1e-4, atol=1e-4)

    print("KERNEL_OK")
</pallas_src>

<mosaic_0001>
module attributes {stable_mosaic.version = 11 : i64} {
  func.func @adamerge_forward_kernel(%arg0: memref<4xf32, #tpu.memory_space<smem>>, %arg1: memref<16x1xi32, #tpu.memory_space<vmem>>, %arg2: memref<16x1xi32, #tpu.memory_space<vmem>>, %arg3: memref<4x32x128xf32, #tpu.memory_space<vmem>>, %arg4: memref<4x32x128xf32, #tpu.memory_space<vmem>>, %arg5: memref<16x128xf32, #tpu.memory_space<vmem>>, %arg6: memref<1x1xf32, #tpu.memory_space<smem>>) attributes {dimension_semantics = [], scalar_prefetch = 0 : i64, scratch_operands = 0 : i64, tpu.core_type = #tpu.core_type<tc>} {
    %c0 = arith.constant 0 : index
    %0 = memref.load %arg0[%c0] : memref<4xf32, #tpu.memory_space<smem>>
    %c0_0 = arith.constant 0 : index
    %c0_1 = arith.constant 0 : index
    %c0_2 = arith.constant 0 : index
    %1 = vector.load %arg3[%c0_0, %c0_1, %c0_2] : memref<4x32x128xf32, #tpu.memory_space<vmem>>, vector<1x32x128xf32>
    %2 = vector.shape_cast %1 : vector<1x32x128xf32> to vector<32x128xf32>
    %3 = vector.broadcast %0 : f32 to vector<32x128xf32>
    %4 = arith.mulf %3, %2 : vector<32x128xf32>
    %c0_3 = arith.constant 0 : index
    %5 = memref.load %arg0[%c0_3] : memref<4xf32, #tpu.memory_space<smem>>
    %c0_4 = arith.constant 0 : index
    %c0_5 = arith.constant 0 : index
    %c0_6 = arith.constant 0 : index
    %6 = vector.load %arg4[%c0_4, %c0_5, %c0_6] : memref<4x32x128xf32, #tpu.memory_space<vmem>>, vector<1x32x128xf32>
    %7 = vector.shape_cast %6 : vector<1x32x128xf32> to vector<32x128xf32>
    %8 = vector.broadcast %5 : f32 to vector<32x128xf32>
    %9 = arith.mulf %8, %7 : vector<32x128xf32>
    %c1 = arith.constant 1 : index
    %10 = memref.load %arg0[%c1] : memref<4xf32, #tpu.memory_space<smem>>
    %c1_7 = arith.constant 1 : index
    %c0_8 = arith.constant 0 : index
    %c0_9 = arith.constant 0 : index
    %11 = vector.load %arg3[%c1_7, %c0_8, %c0_9] : memref<4x32x128xf32, #tpu.memory_space<vmem>>, vector<1x32x128xf32>
    %12 = vector.shape_cast %11 : vector<1x32x128xf32> to vector<32x128xf32>
    %13 = vector.broadcast %10 : f32 to vector<32x128xf32>
    %14 = arith.mulf %13, %12 : vector<32x128xf32>
    %15 = arith.addf %4, %14 : vector<32x128xf32>
    %c1_10 = arith.constant 1 : index
    %16 = memref.load %arg0[%c1_10] : memref<4xf32, #tpu.memory_space<smem>>
    %c1_11 = arith.constant 1 : index
    %c0_12 = arith.constant 0 : index
    %c0_13 = arith.constant 0 : index
    %17 = vector.load %arg4[%c1_11, %c0_12, %c0_13] : memref<4x32x128xf32, #tpu.memory_space<vmem>>, vector<1x32x128xf32>
    %18 = vector.shape_cast %17 : vector<1x32x128xf32> to vector<32x128xf32>
    %19 = vector.broadcast %16 : f32 to vector<32x128xf32>
    %20 = arith.mulf %19, %18 : vector<32x128xf32>
    %21 = arith.addf %9, %20 : vector<32x128xf32>
    %c2 = arith.constant 2 : index
    %22 = memref.load %arg0[%c2] : memref<4xf32, #tpu.memory_space<smem>>
    %c2_14 = arith.constant 2 : index
    %c0_15 = arith.constant 0 : index
    %c0_16 = arith.constant 0 : index
    %23 = vector.load %arg3[%c2_14, %c0_15, %c0_16] : memref<4x32x128xf32, #tpu.memory_space<vmem>>, vector<1x32x128xf32>
    %24 = vector.shape_cast %23 : vector<1x32x128xf32> to vector<32x128xf32>
    %25 = vector.broadcast %22 : f32 to vector<32x128xf32>
    %26 = arith.mulf %25, %24 : vector<32x128xf32>
    %27 = arith.addf %15, %26 : vector<32x128xf32>
    %c2_17 = arith.constant 2 : index
    %28 = memref.load %arg0[%c2_17] : memref<4xf32, #tpu.memory_space<smem>>
    %c2_18 = arith.constant 2 : index
    %c0_19 = arith.constant 0 : index
    %c0_20 = arith.constant 0 : index
    %29 = vector.load %arg4[%c2_18, %c0_19, %c0_20] : memref<4x32x128xf32, #tpu.memory_space<vmem>>, vector<1x32x128xf32>
    %30 = vector.shape_cast %29 : vector<1x32x128xf32> to vector<32x128xf32>
    %31 = vector.broadcast %28 : f32 to vector<32x128xf32>
    %32 = arith.mulf %31, %30 : vector<32x128xf32>
    %33 = arith.addf %21, %32 : vector<32x128xf32>
    %c3 = arith.constant 3 : index
    %34 = memref.load %arg0[%c3] : memref<4xf32, #tpu.memory_space<smem>>
    %c3_21 = arith.constant 3 : index
    %c0_22 = arith.constant 0 : index
    %c0_23 = arith.constant 0 : index
    %35 = vector.load %arg3[%c3_21, %c0_22, %c0_23] : memref<4x32x128xf32, #tpu.memory_space<vmem>>, vector<1x32x128xf32>
    %36 = vector.shape_cast %35 : vector<1x32x128xf32> to vector<32x128xf32>
    %37 = vector.broadcast %34 : f32 to vector<32x128xf32>
    %38 = arith.mulf %37, %36 : vector<32x128xf32>
    %39 = arith.addf %27, %38 : vector<32x128xf32>
    %c3_24 = arith.constant 3 : index
    %40 = memref.load %arg0[%c3_24] : memref<4xf32, #tpu.memory_space<smem>>
    %c3_25 = arith.constant 3 : index
    %c0_26 = arith.constant 0 : index
    %c0_27 = arith.constant 0 : index
    %41 = vector.load %arg4[%c3_25, %c0_26, %c0_27] : memref<4x32x128xf32, #tpu.memory_space<vmem>>, vector<1x32x128xf32>
    %42 = vector.shape_cast %41 : vector<1x32x128xf32> to vector<32x128xf32>
    %43 = vector.broadcast %40 : f32 to vector<32x128xf32>
    %44 = arith.mulf %43, %42 : vector<32x128xf32>
    %45 = arith.addf %33, %44 : vector<32x128xf32>
    %46 = tpu.iota {dimensions = array<i32: 1>} : vector<16x128xi32>
    %c0_28 = arith.constant 0 : index
    %c0_29 = arith.constant 0 : index
    %47 = vector.load %arg1[%c0_28, %c0_29] : memref<16x1xi32, #tpu.memory_space<vmem>>, vector<16x1xi32>
    %c0_30 = arith.constant 0 : index
    %c0_31 = arith.constant 0 : index
    %48 = vector.load %arg2[%c0_30, %c0_31] : memref<16x1xi32, #tpu.memory_space<vmem>>, vector<16x1xi32>
    %49 = vector.broadcast %47 : vector<16x1xi32> to vector<16x128xi32>
    %50 = arith.cmpi eq, %46, %49 : vector<16x128xi32>
    %51 = arith.extui %50 : vector<16x128xi1> to vector<16x128xi32>
    %52 = arith.sitofp %51 : vector<16x128xi32> to vector<16x128xf32>
    %cst = arith.constant dense<0.000000e+00> : vector<16x32xf32>
    %53 = tpu.matmul %52, %39, %cst {dimension_numbers = #tpu.dot_dimension_numbers<[1], [1], [0], [0], [0, 0, 1, 0], [], []>} : vector<16x128xf32>, vector<32x128xf32>, vector<16x32xf32> -> vector<16x32xf32>
    %cst_32 = arith.constant dense<0.000000e+00> : vector<16x128xf32>
    %54 = tpu.matmul %53, %45, %cst_32 {dimension_numbers = #tpu.dot_dimension_numbers<[1], [0], [0], [1], [0, 0, 1, 1], [], []>} : vector<16x32xf32>, vector<32x128xf32>, vector<16x128xf32> -> vector<16x128xf32>
    %c0_33 = arith.constant 0 : index
    %c0_34 = arith.constant 0 : index
    %55 = vector.load %arg5[%c0_33, %c0_34] : memref<16x128xf32, #tpu.memory_space<vmem>>, vector<16x128xf32>
    tpu.vector_store %arg5[%c0_33, %c0_34], %54 {strides = array<i32>} : memref<16x128xf32, #tpu.memory_space<vmem>>, vector<16x128xf32>,
    %cst_35 = arith.constant dense<0xFF800000> : vector<16xf32>
    %56 = vector.multi_reduction <maximumf>, %54, %cst_35 [1] : vector<16x128xf32> to vector<16xf32>
    %57 = vector.shape_cast %56 : vector<16xf32> to vector<16x1xf32>
    %58 = vector.broadcast %57 : vector<16x1xf32> to vector<16x128xf32>
    %59 = arith.subf %54, %58 : vector<16x128xf32>
    %60 = math.exp %59 : vector<16x128xf32>
    %cst_36 = arith.constant dense<0.000000e+00> : vector<16xf32>
    %61 = vector.multi_reduction <add>, %60, %cst_36 [1] : vector<16x128xf32> to vector<16xf32>
    %62 = vector.shape_cast %61 : vector<16xf32> to vector<16x1xf32>
    %63 = math.log %62 : vector<16x1xf32>
    %64 = arith.addf %57, %63 : vector<16x1xf32>
    %65 = vector.broadcast %48 : vector<16x1xi32> to vector<16x128xi32>
    %66 = arith.cmpi eq, %46, %65 : vector<16x128xi32>
    %cst_37 = arith.constant 0.000000e+00 : f32
    %67 = vector.broadcast %cst_37 : f32 to vector<16x128xf32>
    %68 = arith.select %66, %54, %67 : vector<16x128xi1>, vector<16x128xf32>
    %cst_38 = arith.constant dense<0.000000e+00> : vector<16xf32>
    %69 = vector.multi_reduction <add>, %68, %cst_38 [1] : vector<16x128xf32> to vector<16xf32>
    %70 = vector.shape_cast %69 : vector<16xf32> to vector<16x1xf32>
    %71 = arith.subf %64, %70 : vector<16x1xf32>
    %72 = vector.shape_cast %71 : vector<16x1xf32> to vector<1x16x1xf32>
    %cst_39 = arith.constant dense<0.000000e+00> : vector<1xf32>
    %73 = vector.multi_reduction <add>, %72, %cst_39 [1, 2] : vector<1x16x1xf32> to vector<1xf32>
    %74 = vector.shape_cast %73 : vector<1xf32> to vector<1x1x1xf32>
    %75 = vector.extract %74[0, 0, 0] : f32 from vector<1x1x1xf32>
    %cst_40 = arith.constant 6.250000e-02 : f32
    %76 = arith.mulf %75, %cst_40 : f32
    %c0_41 = arith.constant 0 : index
    %c0_42 = arith.constant 0 : index
    %77 = memref.load %arg6[%c0_41, %c0_42] : memref<1x1xf32, #tpu.memory_space<smem>>
    memref.store %76, %arg6[%c0_41, %c0_42] : memref<1x1xf32, #tpu.memory_space<smem>>
    return
  }
}

</mosaic_0001>

<bundles_post_ra>
// kernel: tpu_custom_call.1
= control target key start
LH: loop header
LB: loop body
LE: loop exit
PB: predicated region body
PF: predicated region fallthrough
CT: control target
= control target key end

     0   :  { %12 = vsyncpa [#allocation6], 0  ;;  %s762_s0 = inlined_call_operand.vmem [shape: f32[4], index: 0, kind: input, shape index: {}]   ;;  %s763_s1 = inlined_call_operand.vmem [shape: s32[16,1], index: 1, kind: input, shape index: {}]   ;;  %s764_s2 = inlined_call_operand.vmem [shape: s32[16,1], index: 2, kind: input, shape index: {}]   ;;  %s765_s3 = inlined_call_operand.hbm [shape: f32[4,32,128], index: 3, kind: input, shape index: {}]   ;;  %s766_s4 = inlined_call_operand.hbm [shape: f32[4,32,128], index: 4, kind: input, shape index: {}]   ;;  %s767_s5 = inlined_call_operand.hbm [shape: f32[16,128], index: 5, kind: output, shape index: {0}]   ;;  %s768_s6 = inlined_call_operand.hbm [shape: f32[1,1], index: 6, kind: output, shape index: {1}]  }
   0x1   :  { %13 = vsyncpa [#allocation3], 0 }
   0x2   :  { %14 = vsyncpa [#allocation9], 0 }
   0x3   :  { %15 = vsyncpa [#allocation4], 0 }
   0x4   :  { %16 = vsyncpa [#allocation5], 0  ;;  %s23_s23 = sshll.u32 %s762_s0, 4  ;;  %s24_s23 = int_to_ptr.vmem [resolvable:$true] %s23_s23 }
   0x5   :  { %s508_s24 = scalar_lea.vmem %s24_s23, 16  ;;  %p513_p1 = scmp.lt.s32.totalorder %s24_s23, %s24_s23 }
   0x6   :  { %p509_p0 = scmp.ne.s32.totalorder %s24_s23, %s508_s24  ;;  %p514_p2 = scmp.lt.s32.totalorder %s508_s24, %s508_s24 }
   0x8   :  { %p515_p3 = por %p514_p2, %p513_p1 }
   0xa   :  { %p516_p4 = pnand %p515_p3, %p509_p0 }
   0xc   :  { %519 = shalt.err (!%p516_p4)
}
   0xd   :  { %s606_s25 = smov [#allocation2]   ;;  %s607_s26 = smov [#allocation7]  }
   0xe   :  { %26 = dma.vmem_to_smem %s24_s23, 16, %s606_s25, [#allocation6]  }
   0xf   :  { %s36_s27 = sshll.u32 %s607_s26, 4  ;;  %s520_s30 = scalar_lea.hbm %s765_s3, 2048  ;;  %s37_s27 = int_to_ptr.vmem [resolvable:$true] %s36_s27 }
  0x10   :  { %p521_p5 = scmp.ne.s32.totalorder %s765_s3, %s520_s30  ;;  %p524_p6 = scmp.lt.u32.totalorder %s520_s30, %s765_s3 }
  0x12   :  { %p526_p7 = pnand %p524_p6, %p521_p5 }
  0x14   :  { %529 = shalt.err (!%p526_p7)
}
  0x15   :  { %s530_s10 = scalar_lea.vmem %s37_s27, 2048  ;;  %p535_p9 = scmp.lt.s32.totalorder %s37_s27, %s37_s27 }
  0x16   :  { %p531_p8 = scmp.ne.s32.totalorder %s37_s27, %s530_s10  ;;  %p536_p10 = scmp.lt.s32.totalorder %s530_s10, %s530_s10 }
  0x18   :  { %p537_p11 = por %p536_p10, %p535_p9 }
  0x1a   :  { %p538_p12 = pnand %p537_p11, %p531_p8 }
  0x1c   :  { %541 = shalt.err (!%p538_p12)
}
  0x1d   :  { %s608_s11 = smov 128   ;;  %s609_s12 = smov 8  }
  0x1e   :  { %42 = dma.hbm_to_vmem [thread:$0]  %s765_s3, 2048, %s37_s27, [#allocation3], %s608_s11, %s608_s11, %s609_s12  }
  0x1f   :  { %s610_s15 = smov [#allocation8]   ;;  %s542_s19 = scalar_lea.hbm %s766_s4, 2048 }
  0x20   :  { %s48_s16 = sshll.u32 %s610_s15, 4  ;;  %p543_p13 = scmp.ne.s32.totalorder %s766_s4, %s542_s19  ;;  %s49_s16 = int_to_ptr.vmem [resolvable:$true] %s48_s16 }
  0x21   :  { %p546_p0 = scmp.lt.u32.totalorder %s542_s19, %s766_s4 }
  0x23   :  { %p548_p1 = pnand %p546_p0, %p543_p13 }
  0x25   :  { %551 = shalt.err (!%p548_p1)
}
  0x26   :  { %s552_s24 = scalar_lea.vmem %s49_s16, 2048  ;;  %p557_p3 = scmp.lt.s32.totalorder %s49_s16, %s49_s16 }
  0x27   :  { %p553_p2 = scmp.ne.s32.totalorder %s49_s16, %s552_s24  ;;  %p558_p4 = scmp.lt.s32.totalorder %s552_s24, %s552_s24 }
  0x29   :  { %p559_p5 = por %p558_p4, %p557_p3 }
  0x2b   :  { %p560_p6 = pnand %p559_p5, %p553_p2 }
  0x2d   :  { %563 = shalt.err (!%p560_p6)
}
  0x2e   :  { %54 = dma.hbm_to_vmem [thread:$0]  %s766_s4, 2048, %s49_s16, [#allocation9], %s608_s11, %s608_s11, %s609_s12  }
  0x2f   :  { %596 = dma.done.wait [#allocation6], 16  }
  0x30   :  { %597 = vsyncadd [#allocation6], 4294967280 }
  0x31   :  { %598 = dma.done.wait [#allocation3], 2048  }
  0x32   :  { %599 = vsyncadd [#allocation3], 4294965248 }
  0x33   :  { %600 = dma.done.wait [#allocation9], 2048  }
  0x34   :  { %601 = vsyncadd [#allocation9], 4294965248 }
  0x35   :  { %64 = sfence }
  0x36   :  { %v169_v0 = vld [vmem:[%s763_s1] sm:$0xff]  ;;  %s65_s28 = sld [smem:[#allocation2]]  ;;  %v611_v1 = vmov 0   ;;  %s428_s29 = sld [smem:[#allocation2 + $0x1]]  ;;  %v170_v2 = vld [vmem:[%s763_s1 + $0x8] sm:$0xff]  ;;  %v68_v5 = vld [vmem:[#allocation7 + $0x10] sm:$0xff] }
  0x37   :  { %498 = vset.pattern.permute.xlu0 %v611_v1  ;;  %499 = vset.pattern.permute.xlu1 %v611_v1  ;;  %s429_s30 = sld [smem:[#allocation2 + $0x2]]  ;;  %s430_s8 = sld [smem:[#allocation2 + $0x3]]  ;;  %v66_v3 = vld [vmem:[#allocation7] sm:$0xff]  ;;  %v67_v4 = vld [vmem:[#allocation7 + $0x8] sm:$0xff]  ;;  %v69_v8 = vld [vmem:[#allocation7 + $0x18] sm:$0xff]  ;;  %vm260_vm2 = vcmask 261120  }
  0x38   :  { %174 = vperm.xlu0 %498, %v169_v0   ;;  %v85_v6 = vld [vmem:[#allocation7 + $0x20] sm:$0xff]  ;;  %v86_v7 = vld [vmem:[#allocation7 + $0x28] sm:$0xff]  ;;  %v87_v12 = vld [vmem:[#allocation7 + $0x30] sm:$0xff]  ;;  %vm380_vm5 = vcmask 7168  }
  0x39   :  { %v113_v10 = vld [vmem:[#allocation7 + $0x40] sm:$0xff]  ;;  %v114_v11 = vld [vmem:[#allocation7 + $0x48] sm:$0xff]  ;;  %v88_v24 = vld [vmem:[#allocation7 + $0x38] sm:$0xff] }
  0x3a   :  { %v171_v13 = vld [vmem:[%s764_s2] sm:$0xff]  ;;  %v142_v18 = vld [vmem:[#allocation7 + $0x68] sm:$0xff]  ;;  %v115_v25 = vld [vmem:[#allocation7 + $0x50] sm:$0xff] }
  0x3b   :  { %v141_v17 = vld [vmem:[#allocation7 + $0x60] sm:$0xff]  ;;  %v116_v26 = vld [vmem:[#allocation7 + $0x58] sm:$0xff]  ;;  %v143_v31 = vld [vmem:[#allocation7 + $0x70] sm:$0xff] }
  0x3c   :  { %177 = vperm.xlu0 %498, %v170_v2   ;;  %v689_v9 = vstv %s65_s28  ;;  %v696_v16 = vstv %s428_s29  ;;  %v144_v32 = vld [vmem:[#allocation7 + $0x78] sm:$0xff]  ;;  %v75_v37 = vld [vmem:[#allocation8] sm:$0xff]  ;;  %v76_v38 = vld [vmem:[#allocation8 + $0x8] sm:$0xff] }
  0x3d   :  { %v71_v14 = vmul.f32 %v689_v9, %v66_v3  ;;  %v72_v15 = vmul.f32 %v689_v9, %v67_v4  ;;  %v73_v19 = vmul.f32 %v689_v9, %v68_v5  ;;  %v90_v20 = vmul.f32 %v696_v16, %v85_v6  ;;  %v99_v43 = vld [vmem:[#allocation8 + $0x20] sm:$0xff]  ;;  %v100_v44 = vld [vmem:[#allocation8 + $0x28] sm:$0xff]  ;;  %v77_v61 = vld [vmem:[#allocation8 + $0x10] sm:$0xff] }
  0x3e   :  { %v91_v21 = vmul.f32 %v696_v16, %v86_v7  ;;  %v701_v22 = vstv %s429_s30  ;;  %v74_v23 = vmul.f32 %v689_v9, %v69_v8  ;;  %v706_v29 = vstv %s430_s8  ;;  %v127_v49 = vld [vmem:[#allocation8 + $0x40] sm:$0xff]  ;;  %v128_v50 = vld [vmem:[#allocation8 + $0x48] sm:$0xff]  ;;  %v78_v62 = vld [vmem:[#allocation8 + $0x18] sm:$0xff] }
  0x3f   :  { %v118_v27 = vmul.f32 %v701_v22, %v113_v10  ;;  %v119_v28 = vmul.f32 %v701_v22, %v114_v11  ;;  %v92_v30 = vmul.f32 %v696_v16, %v87_v12  ;;  %v94_v33 = vadd.f32 %v90_v20, %v71_v14  ;;  %v155_v55 = vld [vmem:[#allocation8 + $0x60] sm:$0xff]  ;;  %v156_v60 = vld [vmem:[#allocation8 + $0x68] sm:$0xff]  ;;  %v101_v3 = vld [vmem:[#allocation8 + $0x30] sm:$0xff] }
  0x40   :  { %365 = vperm.xlu0 %498, %v171_v13   ;;  %v95_v34 = vadd.f32 %v91_v21, %v72_v15  ;;  %v146_v35 = vmul.f32 %v706_v29, %v141_v17  ;;  %v147_v36 = vmul.f32 %v706_v29, %v142_v18  ;;  %v93_v39 = vmul.f32 %v696_v16, %v88_v24  ;;  %v102_v4 = vld [vmem:[#allocation8 + $0x38] sm:$0xff]  ;;  %v129_v10 = vld [vmem:[#allocation8 + $0x50] sm:$0xff] }
  0x41   :  { %v96_v40 = vadd.f32 %v92_v30, %v73_v19  ;;  %v120_v41 = vmul.f32 %v701_v22, %v115_v25  ;;  %v121_v42 = vmul.f32 %v701_v22, %v116_v26  ;;  %v122_v45 = vadd.f32 %v118_v27, %v94_v33  ;;  %v130_v11 = vld [vmem:[#allocation8 + $0x58] sm:$0xff]  ;;  %v157_v12 = vld [vmem:[#allocation8 + $0x70] sm:$0xff] }
  0x42   :  { %v123_v46 = vadd.f32 %v119_v28, %v95_v34  ;;  %v148_v47 = vmul.f32 %v706_v29, %v143_v31  ;;  %v149_v48 = vmul.f32 %v706_v29, %v144_v32  ;;  %v97_v51 = vadd.f32 %v93_v39, %v74_v23  ;;  %v158_v23 = vld [vmem:[#allocation8 + $0x78] sm:$0xff] }
  0x43   :  { %v124_v52 = vadd.f32 %v120_v41, %v96_v40  ;;  %v79_v53 = vmul.f32 %v75_v37, %v689_v9  ;;  %v80_v54 = vmul.f32 %v76_v38, %v689_v9  ;;  %v150_v56 = vadd.f32 %v146_v35, %v122_v45  ;;  %v172_v45 = vld [vmem:[%s764_s2 + $0x8] sm:$0xff]  ;;  %s613_s2 = smov [#allocation10]  }
  0x44   :  { %v151_v57 = vadd.f32 %v147_v36, %v123_v46  ;;  %v103_v58 = vmul.f32 %v99_v43, %v696_v16  ;;  %v104_v59 = vmul.f32 %v100_v44, %v696_v16  ;;  %v125_v63 = vadd.f32 %v121_v42, %v97_v51  ;;  %s401_s13 = sshll.u32 %s613_s2, 4  ;;  %s402_s13 = int_to_ptr.vmem [resolvable:$true] %s401_s13 }
  0x45   :  { %v152_v0 = vadd.f32 %v148_v47, %v124_v52  ;;  %v131_v1 = vmul.f32 %v127_v49, %v701_v22  ;;  %v132_v2 = vmul.f32 %v128_v50, %v701_v22  ;;  %v159_v8 = vmul.f32 %v155_v55, %v706_v29  ;;  %s564_s14 = scalar_lea.vmem %s402_s13, 256  ;;  %p569_p8 = scmp.lt.s32.totalorder %s402_s13, %s402_s13 }
  0x46   :  { %v471_v5 = vpack.c.bf16 %v151_v57, %v150_v56  ;;  %v107_v6 = vadd.f32 %v103_v58, %v79_v53  ;;  %v108_v7 = vadd.f32 %v104_v59, %v80_v54  ;;  %v153_v13 = vadd.f32 %v149_v48, %v125_v63  ;;  %p565_p7 = scmp.ne.s32.totalorder %s402_s13, %s564_s14  ;;  %p570_p9 = scmp.lt.s32.totalorder %s564_s14, %s564_s14 }
  0x47   :  { %v160_v14 = vmul.f32 %v156_v60, %v706_v29  ;;  %v81_v15 = vmul.f32 %v77_v61, %v689_v9  ;;  %v82_v17 = vmul.f32 %v78_v62, %v689_v9  ;;  %v105_v20 = vmul.f32 %v101_v3, %v696_v16 }
  0x48   :  { %472 = vmatprep.subr.bf16.mxu0 %v471_v5  ;;  %v135_v18 = vadd.f32 %v131_v1, %v107_v6  ;;  %v136_v19 = vadd.f32 %v132_v2, %v108_v7  ;;  %v106_v21 = vmul.f32 %v102_v4, %v696_v16  ;;  %v475_v24 = vpack.c.bf16 %v153_v13, %v152_v0  ;;  %p571_p10 = por %p570_p9, %p569_p8 }
  0x49   :  { %474 = vmatpush3.bf16.xpose.msra.mxu0 %v471_v5  ;;  %v133_v25 = vmul.f32 %v129_v10, %v701_v22  ;;  %v134_v26 = vmul.f32 %v130_v11, %v701_v22  ;;  %v161_v27 = vmul.f32 %v157_v12, %v706_v29  ;;  %v109_v31 = vadd.f32 %v105_v20, %v81_v15 }
  0x4a   :  { %v163_v28 = vadd.f32 %v159_v8, %v135_v18  ;;  %v164_v30 = vadd.f32 %v160_v14, %v136_v19  ;;  %v110_v9 = vadd.f32 %v106_v21, %v82_v17  ;;  %476 = vmatprep.subr.bf16.mxu0 %v475_v24  ;;  %v162_v32 = vmul.f32 %v158_v23, %v706_v29  ;;  %p572_p11 = pnand %p571_p10, %p565_p7 }
  0x4b   :  { %v137_v34 = vadd.f32 %v133_v25, %v109_v31  ;;  %v167_v22 = vlaneseq  ;;  %v612_v40 = vmov 1.0  }
  0x4c   :  { %v479_v33 = vpack.c.bf16 %v164_v30, %v163_v28  ;;  %v138_v35 = vadd.f32 %v134_v26, %v110_v9 }
  0x4d   :  { %v165_v16 = vadd.f32 %v161_v27, %v137_v34  ;;  %v168_v38 = vand.u32 127, %v167_v22 }
  0x4e   :  { %480 = vmatprep.subr.bf16.mxu1 %v479_v33  ;;  %v166_v36 = vadd.f32 %v162_v32, %v138_v35 }
  0x4f   :  { %482 = vmatpush3.bf16.msra.mxu1 %v479_v33 }
  0x50   :  { %v483_v37 = vpack.c.bf16 %v166_v36, %v165_v16 }
  0x51   :  { %478 = vmatpush3.bf16.xpose.msra.mxu0 %v475_v24 }
  0x52   :  { %484 = vmatprep.subr.bf16.mxu1 %v483_v37 }
  0x53   :  { %486 = vmatpush3.bf16.msra.mxu1 %v483_v37 }
  0xb7   :  { %v175_v39 = vpop.permute.xlu0 %174 }
  0xb8   :  { %vm179_vm0 = vcmp.eq.s32.totalorder %v168_v38, %v175_v39 }
  0xb9   :  { %457 = vmatprep.mubr.msk.f32.mxu0 %vm179_vm0, %v612_v40 }
  0xbb   :  { %v178_v41 = vpop.permute.xlu0 %177 }
  0xbc   :  { %vm180_vm1 = vcmp.eq.s32.totalorder %v168_v38, %v178_v41 }
  0xbd   :  { %458 = vmatmul.mubr.msk.f32.vlgmr.msra.gmra.mrb[0].mxu0 %vm180_vm1, %v612_v40 }
  0xbf   :  { %v366_v54 = vpop.permute.xlu0 %365 }
  0xc0   :  { %vm370_vm3 = vcmp.eq.s32.totalorder %v168_v38, %v366_v54 }
 0x190   :  { %v459_v29 = vpop.f32.mrb[0].mxu0 }
 0x191   :  { %v251_v42 = vpop.f32.mrb[1].mxu0 }
 0x192   :  { %468 = vmatprep.mubr.msk.f32.mxu1 %vm260_vm2, %v251_v42 }
 0x193   :  { %469 = vmatmul.mubr.msk.f32.vlgmr.msra.gmra.mrb[0].mxu1 %vm260_vm2, %v459_v29 }
 0x266   :  { %v470_v43 = vpop.f32.mrb[0].mxu1 }
 0x267   :  { %343 = vst [vmem:[#allocation10 + $0x8] sm:$0xff] %v470_v43  ;;  %346 = vmax.xlane.f32.xlu1 %v470_v43  ;;  %v333_v44 = vpop.f32.mrb[1].mxu1 }
 0x268   :  { %342 = vst [vmem:[#allocation10] sm:$0xff] %v333_v44  ;;  %v372_v56 = vsel %vm370_vm3, %v333_v44, 0.0 }
 0x26b   :  { %344 = vmax.xlane.f32.xlu1 %v333_v44 }
 0x27c   :  { %368 = vperm.xlu1 %499, %v172_v45  }
 0x2f4   :  { %v347_v46 = vpop.xlane.xlu1 %346 }
 0x2f5   :  { %v349_v47 = vsub.f32 %v470_v43, %v347_v46 }
 0x2f7   :  { %v352_v48 = vmul.f32 1.442695, %v349_v47 }
 0x2f8   :  { %v345_v49 = vpop.xlane.xlu1 %344 }
 0x2f9   :  { %500 = vpow2.f32 %v352_v48  ;;  %v348_v50 = vsub.f32 %v333_v44, %v345_v49 }
 0x2fb   :  { %v350_v51 = vmul.f32 1.442695, %v348_v50 }
 0x2fc   :  { %v369_v55 = vpop.permute.xlu1 %368 }
 0x2fd   :  { %502 = vpow2.f32 %v350_v51  ;;  %vm371_vm4 = vcmp.eq.s32.totalorder %v168_v38, %v369_v55 }
 0x2fe   :  { %v373_v57 = vsel %vm371_vm4, %v470_v43, 0.0 }
 0x303   :  { %v501_v52 = vpop.eup %500 }
 0x304   :  { %356 = vadd.xlane.f32.xlu1 %v501_v52 }
 0x307   :  { %v503_v53 = vpop.eup %502 }
 0x308   :  { %354 = vadd.xlane.f32.xlu0 %v503_v53 }
 0x30c   :  { %374 = vadd.xlane.f32.xlu0 %v372_v56 }
 0x310   :  { %376 = vadd.xlane.f32.xlu0 %v373_v57 }
 0x391   :  { %v357_v58 = vpop.xlane.xlu1 %356 }
 0x392   :  { %504 = vlog2.f32 %v357_v58 }
 0x395   :  { %v355_v59 = vpop.xlane.xlu0 %354 }
 0x396   :  { %506 = vlog2.f32 %v355_v59 }
 0x399   :  { %v375_v61 = vpop.xlane.xlu0 %374 }
 0x39c   :  { %v505_v60 = vpop.eup %504 }
 0x39d   :  { %v361_v62 = vmul.f32 0.6931472, %v505_v60  ;;  %v377_v2 = vpop.xlane.xlu0 %376 }
 0x39f   :  { %v363_v63 = vadd.f32 %v361_v62, %v347_v46 }
 0x3a0   :  { %v507_v0 = vpop.eup %506 }
 0x3a1   :  { %v359_v1 = vmul.f32 0.6931472, %v507_v0  ;;  %v379_v4 = vsub.f32 %v363_v63, %v377_v2 }
 0x3a3   :  { %v362_v3 = vadd.f32 %v359_v1, %v345_v49  ;;  %v382_v7 = vsel %vm380_vm5, %v379_v4, 0.0 }
 0x3a5   :  { %v378_v5 = vsub.f32 %v362_v3, %v375_v61 }
 0x3a7   :  { %v381_v6 = vsel %vm380_vm5, %v378_v5, 0.0 }
 0x3a8   :  { %v383_v8 = vadd.f32 %v382_v7, %v381_v6 }
 0x3aa   :  { %384 = vadd.xlane.f32.xlu0 %v383_v8 }
 0x3ab   :  { %575 = shalt.err (!%p572_p11)
}
 0x3ac   :  { %s576_s17 = scalar_lea.hbm %s767_s5, 256 }
 0x3ad   :  { %p577_p12 = scmp.ne.s32.totalorder %s767_s5, %s576_s17  ;;  %p580_p13 = scmp.lt.u32.totalorder %s576_s17, %s767_s5 }
 0x3af   :  { %p582_p0 = pnand %p580_p13, %p577_p12 }
 0x3b1   :  { %585 = shalt.err (!%p582_p0)
}
 0x3b2   :  { %407 = dma.vmem_to_hbm [thread:$0]  %s402_s13, 256, %s767_s5, [#allocation4], %s608_s11, %s608_s11, %s609_s12  }
 0x3b3   :  { %s586_s27 = scalar_lea.hbm %s768_s6, 16 }
 0x3b4   :  { %p587_p1 = scmp.ne.s32.totalorder %s768_s6, %s586_s27  ;;  %p590_p2 = scmp.lt.u32.totalorder %s586_s27, %s768_s6 }
 0x3b6   :  { %p592_p3 = pnand %p590_p2, %p587_p1 }
 0x437   :  { %v385_v10 = vpop.xlane.xlu0 %384 }
 0x438   :  { %v386_v11 = vrot.slane %v385_v10, 4 }
 0x43a   :  { %v387_v12 = vadd.f32 %v386_v11, %v385_v10 }
 0x43c   :  { %v388_v13 = vrot.slane %v387_v12, 2 }
 0x43e   :  { %v389_v14 = vadd.f32 %v388_v13, %v387_v12 }
 0x440   :  { %v390_v15 = vrot.slane %v389_v14, 1 }
 0x442   :  { %v391_v17 = vadd.f32 %v390_v15, %v389_v14 }
 0x444   :  { %487 = vpush %v391_v17 }
 0x475   :  { %s488_s24 = spop %487 }
 0x476   :  { %s393_s3 = smul.f32 0.0625, %s488_s24 }
 0x478   :  { %395 = sst [smem:[#allocation11]] %s393_s3 }
 0x479   :  { %595 = shalt.err (!%p592_p3)
}
 0x47a   :  { %s614_s12 = smov [#allocation11]  }
 0x47b   :  { %415 = dma.smem_to_hbm %s614_s12, 16, %s768_s6, [#allocation5]  }
 0x47c   :  { %602 = dma.done.wait [#allocation4], 256  }
 0x47d   :  { %603 = vsyncadd [#allocation4], 4294967040 }
 0x47e   :  { %604 = dma.done.wait [#allocation5], 16  }
 0x47f   :  { %605 = vsyncadd [#allocation5], 4294967280 }
 0x480   :  { %422 = sfence }
 0x481   :  { %423 = vsyncpa [#allocation3], 1 }
 0x482   :  { %424 = vsyncpa [#allocation9], 1 }
 0x483   :  { %425 = vsyncpa [#allocation4], 1 }
 0x484   :  { %426 = vsyncpa [#allocation5], 1 }
 0x485   :  { %427 = vsyncpa [#allocation6], 1 }

</bundles_post_ra>
